<compile_context>
chip_gen: v5e
topology: v5e:2x2
jax: 0.10.0
libtpu: 0.0.40
codegen_flags: <defaults>
</compile_context>

<pallas_src>
import functools

import jax
import jax.numpy as jnp
from jax.experimental import pallas as pl
from jax.experimental.pallas import tpu as pltpu

_LANES = 128            # lane-dense last dim: full vreg lane utilisation
_FAST_PATH_MAX = 1 << 18  # below this element count, plain jnp is faster


def _round_up(x, m):
    return ((x + m - 1) // m) * m


def _default_n_splits():
    # Two TensorCores per chip only on v7x; on v5e/v6e an extra split is pure
    # overhead (serialized grid steps + extra accumulator flush).
    try:
        kind = jax.devices()[0].device_kind.lower()
        if "v7" in kind:
            return 2
    except Exception:
        pass
    return 1


def _jnp_log_rmse_sum(y_hat_f32, y_f32):
    d = jnp.log(jnp.maximum(y_hat_f32, jnp.float32(1.0))) - jnp.log(y_f32)
    return jnp.sum(d * d)


def _logrmse_kernel(yhat_ref, y_ref, out_ref, acc_ref, *,
                    tiles_per_split, tile_m, n_rows, lanes):
    c = pl.program_id(0)   # parallel split (megacore axis on v7x)
    i = pl.program_id(1)   # reduction axis over row tiles

    @pl.when(i == 0)
    def _():
        acc_ref[...] = jnp.zeros_like(acc_ref)

    # Elementwise hot path: clamp, log, squared difference (VPU + EUP only).
    yh = jnp.maximum(yhat_ref[...].astype(jnp.float32), jnp.float32(1.0))
    d = jnp.log(yh) - jnp.log(y_ref[...].astype(jnp.float32))
    sq = d * d

    # Mask rows beyond the true row count (partial/overhanging tail tile and
    # splits whose tiles fall entirely out of range).  OOB block contents may
    # be garbage; jnp.where selects 0.0 so NaN/Inf there cannot propagate.
    row_start = (c * tiles_per_split + i) * tile_m
    row_ids = row_start + jax.lax.broadcasted_iota(jnp.int32, (tile_m, 1), 0)
    masked = jnp.where(row_ids < n_rows, sq, jnp.float32(0.0))

    # Fixed (8, lanes) accumulator: the axis-0 sum is plain vreg-wise VPU
    # adds across the tile_m//8 sublane groups (no cross-lane XLU work).
    acc_ref[...] += masked.reshape(tile_m // 8, 8, lanes).sum(axis=0)

    # One small (8x128 -> scalar) cross-lane reduce per split, last step only.
    @pl.when(i == tiles_per_split - 1)
    def _():
        out_ref[...] = jnp.sum(acc_ref[...]).reshape(1, 1, 1)


def log_rmse(y_hat, y, *, tile_m=8192, n_splits=None, lanes=_LANES,
             force_kernel=False):
    """Scalar log-RMSE, matching sqrt(nn.MSELoss()(log(max(y_hat,1)), log(y)))."""
    assert y_hat.shape == y.shape
    n_total = y_hat.size          # MSELoss 'mean' divides by the original count
    assert n_total > 0

    yh_flat = y_hat.reshape(-1)
    yt_flat = y.reshape(-1)

    n_full_rows = n_total // lanes
    rem = n_total - n_full_rows * lanes

    # Small-input fast path: Kaggle-sized (batch, 1) inputs are launch-overhead
    # dominated; plain jnp is strictly faster there.
    if n_full_rows == 0 or (not force_kernel and n_total < _FAST_PATH_MAX):
        total = _jnp_log_rmse_sum(yh_flat.astype(jnp.float32),
                                  yt_flat.astype(jnp.float32))
        return jnp.sqrt(total / jnp.float32(n_total))

    if n_splits is None:
        n_splits = _default_n_splits()

    # Kernel streams only the full 128-wide rows (contiguous prefix, no copy
    # of a concatenated/padded array); the tiny remainder is added below.
    n_rows = n_full_rows
    yh_main = yh_flat[:n_rows * lanes].reshape(n_rows, lanes)
    yt_main = yt_flat[:n_rows * lanes].reshape(n_rows, lanes)

    # Row tile: always a multiple of 8 (sublane rule) so the (tile_m//8,8,128)
    # accumulator reshape is valid; may overhang n_rows (masked in-kernel).
    tile_m = max(8, (int(tile_m) // 8) * 8)
    tile_m = min(tile_m, _round_up(n_rows, 8))
    total_tiles = pl.cdiv(n_rows, tile_m)
    tiles_per_split = pl.cdiv(total_tiles, n_splits)

    def in_map(c, i):
        # Clamp so tiles that are fully out of range (masked in-kernel) still
        # map to an in-bounds block.
        return (jnp.minimum(c * tiles_per_split + i, total_tiles - 1), 0)

    kernel = functools.partial(
        _logrmse_kernel,
        tiles_per_split=tiles_per_split, tile_m=tile_m, n_rows=n_rows,
        lanes=lanes)

    itemsize = jnp.dtype(y_hat.dtype).itemsize
    tile_bytes = tile_m * lanes * itemsize
    # 2 inputs x 2 pipeline buffers + small accumulator/headroom; clamp so we
    # stay inside every generation's VMEM (v7x = 64 MiB / TC).
    vmem_limit = int(min(max(4 * tile_bytes + (2 << 20), 32 << 20), 64 << 20))

    n_main = n_rows * lanes
    partials = pl.pallas_call(
        kernel,
        out_shape=jax.ShapeDtypeStruct((n_splits, 1, 1), jnp.float32),
        grid_spec=pltpu.PrefetchScalarGridSpec(
            num_scalar_prefetch=0,
            grid=(n_splits, tiles_per_split),
            in_specs=[
                pl.BlockSpec((tile_m, lanes), in_map),
                pl.BlockSpec((tile_m, lanes), in_map),
            ],
            out_specs=pl.BlockSpec((1, 1, 1), lambda c, i: (c, 0, 0)),
            scratch_shapes=[pltpu.VMEM((8, lanes), jnp.float32)],
        ),
        compiler_params=pltpu.CompilerParams(
            dimension_semantics=("parallel", "arbitrary"),
            vmem_limit_bytes=vmem_limit,
        ),
        cost_estimate=pl.CostEstimate(
            flops=5 * n_main,
            transcendentals=2 * n_main,
            bytes_accessed=2 * n_main * itemsize + 4 * n_splits,
        ),
    )(yh_main, yt_main)

    total = jnp.sum(partials)
    if rem:
        # <128-element remainder: handled with a tiny jnp expression instead
        # of padding/copying the kernel inputs in HBM.
        total = total + _jnp_log_rmse_sum(
            yh_flat[n_rows * lanes:].astype(jnp.float32),
            yt_flat[n_rows * lanes:].astype(jnp.float32))

    return jnp.sqrt(total / jnp.float32(n_total))


def _reference(y_hat, y):
    return jnp.sqrt(jnp.mean((jnp.log(jnp.maximum(y_hat, 1.0)) - jnp.log(y)) ** 2))


if __name__ == "__main__":
    key = jax.random.PRNGKey(0)
    k1, k2, k3, k4, k5, k6 = jax.random.split(key, 6)

    # 1) Module-typical tiny (batch, 1) shapes -> small-input jnp fast path.
    batch = 8
    y_hat = jax.random.uniform(k1, (batch, 1), jnp.float32, minval=0.3, maxval=3.0)
    y = jax.random.uniform(k2, (batch, 1), jnp.float32, minval=1.0, maxval=5.0)
    loss = jax.block_until_ready(log_rmse(y_hat, y))
    ref = _reference(y_hat, y)
    assert jnp.allclose(loss, ref, rtol=1e-5, atol=1e-6), (loss, ref)

    # 2) Pallas kernel path forced on a small input: exercises the
    #    overhanging / masked row tile and the <128-element remainder path.
    batch2 = 1000
    y_hat2 = jax.random.uniform(k3, (batch2, 1), jnp.float32, minval=0.3, maxval=3.0)
    y2 = jax.random.uniform(k4, (batch2, 1), jnp.float32, minval=1.0, maxval=5.0)
    loss2 = jax.block_until_ready(log_rmse(y_hat2, y2, force_kernel=True))
    ref2 = _reference(y_hat2, y2)
    assert jnp.allclose(loss2, ref2, rtol=1e-5, atol=1e-6), (loss2, ref2)

    # 3) Kernel path at a size past the fast-path threshold: multiple row
    #    tiles, masked tail tile, and a lane remainder.
    batch3 = 128 * 9000 + 37
    y_hat3 = jax.random.uniform(k5, (batch3, 1), jnp.float32, minval=0.3, maxval=3.0)
    y3 = jax.random.uniform(k6, (batch3, 1), jnp.float32, minval=1.0, maxval=5.0)
    loss3 = jax.block_until_ready(log_rmse(y_hat3, y3))
    ref3 = _reference(y_hat3, y3)
    assert jnp.allclose(loss3, ref3, rtol=2e-4, atol=1e-6), (loss3, ref3)

    print("KERNEL_OK")
</pallas_src>

<mosaic_0001>
module attributes {stable_mosaic.version = 11 : i64} {
  func.func @_logrmse_kernel(%arg0: i32, %arg1: i32, %arg2: memref<8x128xf32, #tpu.memory_space<vmem>>, %arg3: memref<8x128xf32, #tpu.memory_space<vmem>>, %arg4: memref<1x1x1xf32, #tpu.memory_space<vmem>>, %arg5: memref<8x128xf32, #tpu.memory_space<vmem>>) attributes {dimension_semantics = [#tpu.dimension_semantics<parallel>, #tpu.dimension_semantics<arbitrary>], iteration_bounds = array<i64: 1, 1>, scalar_prefetch = 0 : i64, scratch_operands = 1 : i64, tpu.core_type = #tpu.core_type<tc>, window_params = [{transform_indices = @transform_0, window_bounds = array<i64: 8, 128>}, {transform_indices = @transform_1, window_bounds = array<i64: 8, 128>}, {transform_indices = @transform_2, window_bounds = array<i64: 1, 1, 1>}]} {
    %c0_i32 = arith.constant 0 : i32
    %0 = arith.cmpi eq, %arg1, %c0_i32 : i32
    %1 = arith.extui %0 : i1 to i32
    %c0_i32_0 = arith.constant 0 : i32
    %2 = arith.cmpi ne, %1, %c0_i32_0 : i32
    scf.if %2 {
      %cst_12 = arith.constant 0.000000e+00 : f32
      %31 = vector.broadcast %cst_12 : f32 to vector<8x128xf32>
      %c0_13 = arith.constant 0 : index
      %c0_14 = arith.constant 0 : index
      %32 = vector.load %arg5[%c0_13, %c0_14] : memref<8x128xf32, #tpu.memory_space<vmem>>, vector<8x128xf32>
      tpu.vector_store %arg5[%c0_13, %c0_14], %31 {strides = array<i32>} : memref<8x128xf32, #tpu.memory_space<vmem>>, vector<8x128xf32>,
    } else {
    }
    %c0 = arith.constant 0 : index
    %c0_1 = arith.constant 0 : index
    %3 = vector.load %arg2[%c0, %c0_1] : memref<8x128xf32, #tpu.memory_space<vmem>>, vector<8x128xf32>
    %cst = arith.constant 1.000000e+00 : f32
    %4 = vector.broadcast %cst : f32 to vector<8x128xf32>
    %5 = arith.maximumf %3, %4 : vector<8x128xf32>
    %6 = math.log %5 : vector<8x128xf32>
    %c0_2 = arith.constant 0 : index
    %c0_3 = arith.constant 0 : index
    %7 = vector.load %arg3[%c0_2, %c0_3] : memref<8x128xf32, #tpu.memory_space<vmem>>, vector<8x128xf32>
    %8 = math.log %7 : vector<8x128xf32>
    %9 = arith.subf %6, %8 : vector<8x128xf32>
    %10 = arith.mulf %9, %9 : vector<8x128xf32>
    %c1_i32 = arith.constant 1 : i32
    %11 = arith.muli %arg0, %c1_i32 : i32
    %12 = arith.addi %11, %arg1 : i32
    %c8_i32 = arith.constant 8 : i32
    %13 = arith.muli %12, %c8_i32 : i32
    %14 = tpu.iota {dimensions = array<i32: 0>} : vector<8x1xi32>
    %15 = vector.broadcast %13 : i32 to vector<8x1xi32>
    %16 = arith.addi %15, %14 : vector<8x1xi32>
    %c7_i32 = arith.constant 7 : i32
    %17 = vector.broadcast %c7_i32 : i32 to vector<8x1xi32>
    %18 = arith.cmpi slt, %16, %17 : vector<8x1xi32>
    %cst_4 = arith.constant 0.000000e+00 : f32
    %19 = vector.shape_cast %18 : vector<8x1xi1> to vector<8x1xi1>
    %20 = vector.broadcast %19 : vector<8x1xi1> to vector<8x128xi1>
    %21 = vector.broadcast %cst_4 : f32 to vector<8x128xf32>
    %22 = arith.select %20, %10, %21 : vector<8x128xi1>, vector<8x128xf32>
    %c0_5 = arith.constant 0 : index
    %c0_6 = arith.constant 0 : index
    %23 = vector.load %arg5[%c0_5, %c0_6] : memref<8x128xf32, #tpu.memory_space<vmem>>, vector<8x128xf32>
    %24 = vector.shape_cast %22 : vector<8x128xf32> to vector<1x8x128xf32>
    %cst_7 = arith.constant dense<0.000000e+00> : vector<8x128xf32>
    %25 = vector.multi_reduction <add>, %24, %cst_7 [0] : vector<1x8x128xf32> to vector<8x128xf32>
    %26 = arith.addf %23, %25 : vector<8x128xf32>
    %c0_8 = arith.constant 0 : index
    %c0_9 = arith.constant 0 : index
    %27 = vector.load %arg5[%c0_8, %c0_9] : memref<8x128xf32, #tpu.memory_space<vmem>>, vector<8x128xf32>
    tpu.vector_store %arg5[%c0_8, %c0_9], %26 {strides = array<i32>} : memref<8x128xf32, #tpu.memory_space<vmem>>, vector<8x128xf32>,
    %c0_i32_10 = arith.constant 0 : i32
    %28 = arith.cmpi eq, %arg1, %c0_i32_10 : i32
    %29 = arith.extui %28 : i1 to i32
    %c0_i32_11 = arith.constant 0 : i32
    %30 = arith.cmpi ne, %29, %c0_i32_11 : i32
    scf.if %30 {
      %c0_12 = arith.constant 0 : index
      %c0_13 = arith.constant 0 : index
      %31 = vector.load %arg5[%c0_12, %c0_13] : memref<8x128xf32, #tpu.memory_space<vmem>>, vector<8x128xf32>
      %32 = vector.shape_cast %31 : vector<8x128xf32> to vector<1x8x128xf32>
      %cst_14 = arith.constant dense<0.000000e+00> : vector<1xf32>
      %33 = vector.multi_reduction <add>, %32, %cst_14 [1, 2] : vector<1x8x128xf32> to vector<1xf32>
      %34 = vector.shape_cast %33 : vector<1xf32> to vector<1x1x1xf32>
      %35 = vector.extract %34[0, 0, 0] : f32 from vector<1x1x1xf32>
      %36 = vector.broadcast %35 : f32 to vector<1x1x1xf32>
      %c0_15 = arith.constant 0 : index
      %c0_16 = arith.constant 0 : index
      %c0_17 = arith.constant 0 : index
      %37 = vector.load %arg4[%c0_15, %c0_16, %c0_17] : memref<1x1x1xf32, #tpu.memory_space<vmem>>, vector<1x1x1xf32>
      tpu.vector_store %arg4[%c0_15, %c0_16, %c0_17], %36 {strides = array<i32>} : memref<1x1x1xf32, #tpu.memory_space<vmem>>, vector<1x1x1xf32>,
    } else {
    }
    return
  }
  func.func @transform_0(%arg0: i32, %arg1: i32) -> (i32, i32) {
    %c1_i32 = arith.constant 1 : i32
    %0 = arith.muli %arg0, %c1_i32 : i32
    %1 = arith.addi %0, %arg1 : i32
    %c0_i32 = arith.constant 0 : i32
    %2 = arith.minsi %1, %c0_i32 : i32
    %c0_i32_0 = arith.constant 0 : i32
    %c0_i32_1 = arith.constant 0 : i32
    return %2, %c0_i32_0 : i32, i32
  }
  func.func @transform_1(%arg0: i32, %arg1: i32) -> (i32, i32) {
    %c1_i32 = arith.constant 1 : i32
    %0 = arith.muli %arg0, %c1_i32 : i32
    %1 = arith.addi %0, %arg1 : i32
    %c0_i32 = arith.constant 0 : i32
    %2 = arith.minsi %1, %c0_i32 : i32
    %c0_i32_0 = arith.constant 0 : i32
    %c0_i32_1 = arith.constant 0 : i32
    return %2, %c0_i32_0 : i32, i32
  }
  func.func @transform_2(%arg0: i32, %arg1: i32) -> (i32, i32, i32) {
    %c0_i32 = arith.constant 0 : i32
    %c0_i32_0 = arith.constant 0 : i32
    %c0_i32_1 = arith.constant 0 : i32
    return %arg0, %c0_i32, %c0_i32_0 : i32, i32, i32
  }
}

</mosaic_0001>

<bundles_post_ra>
// kernel: tpu_custom_call.1
= control target key start
LH: loop header
LB: loop body
LE: loop exit
PB: predicated region body
PF: predicated region fallthrough
CT: control target
= control target key end

     0   :  { %7 = vsyncpa [#allocation4], 0  ;;  %s236_s0 = inlined_call_operand.hbm [shape: f32[7,128], index: 0, kind: input, shape index: {}]   ;;  %s237_s1 = inlined_call_operand.hbm [shape: f32[7,128], index: 1, kind: input, shape index: {}]   ;;  %s238_s2 = inlined_call_operand.hbm [shape: f32[1,1,1], index: 2, kind: output, shape index: {}]  }
   0x1   :  { %8 = vsyncpa [#allocation7], 0 }
   0x2   :  { %9 = vsyncpa [#allocation5], 0  ;;  %s20_s11 = sshll.u32 %s236_s0, 4  ;;  %s209_s12 = smov [#allocation3]   ;;  %s21_s11 = int_to_ptr.hbm [resolvable:$true] %s20_s11 }
   0x3   :  { %s22_s13 = sshll.u32 %s209_s12, 4  ;;  %s36_s16 = sshll.u32 %s237_s1, 4  ;;  %s23_s13 = int_to_ptr.vmem [resolvable:$true] %s22_s13  ;;  %s37_s16 = int_to_ptr.hbm [resolvable:$true] %s36_s16 }
   0x4   :  { %25 = dma.hbm_to_vmem [thread:$0]  %s21_s11, 128, %s23_s13, [#allocation4]  }
   0x5   :  { %s210_s17 = smov [#allocation6]  }
   0x6   :  { %s38_s18 = sshll.u32 %s210_s17, 4  ;;  %s39_s18 = int_to_ptr.vmem [resolvable:$true] %s38_s18 }
   0x7   :  { %41 = dma.hbm_to_vmem [thread:$0]  %s37_s16, 128, %s39_s18, [#allocation7]  }
   0x8   :  { %203 = dma.done.wait [#allocation4], 128  }
   0x9   :  { %204 = vsyncadd [#allocation4], 4294967168 }
   0xa   :  { %205 = dma.done.wait [#allocation7], 128  }
   0xb   :  { %206 = vsyncadd [#allocation7], 4294967168  ;;  %v61_v0 = vld [vmem:[#allocation3] sm:$0xff]  ;;  %v65_v1 = vld [vmem:[#allocation6] sm:$0xff]  ;;  %v72_v3 = vlaneseq  ;;  %s211_s0 = smov [#allocation8]   ;;  %s107_s21 = sshll.u32 %s238_s2, 4  ;;  %s108_s21 = int_to_ptr.hbm [resolvable:$true] %s107_s21 }
   0xc   :  { %v62_v2 = vmax.f32 %v61_v0, 1.0  ;;  %127 = vlog2.f32 %v65_v1  ;;  %s105_s1 = sshll.u32 %s211_s0, 4  ;;  %vm98_vm1 = vcmask 0   ;;  %s106_s1 = int_to_ptr.vmem [resolvable:$true] %s105_s1 }
   0xd   :  { %v73_v7 = vshrl.u32 %v72_v3, 7 }
   0xe   :  { %129 = vlog2.f32 %v62_v2 }
   0xf   :  { %vm76_vm0 = vcmp.lt.s32.totalorder %v73_v7, 7 }
  0x12   :  { %v128_v4 = vpop.eup %127 }
  0x13   :  { %v67_v5 = vmul.f32 0.6931472, %v128_v4 }
  0x14   :  { %v130_v6 = vpop.eup %129 }
  0x15   :  { %v64_v8 = vmul.f32 0.6931472, %v130_v6 }
  0x17   :  { %v68_v9 = vsub.f32 %v64_v8, %v67_v5 }
  0x19   :  { %v69_v10 = vmul.f32 %v68_v9, %v68_v9 }
  0x1b   :  { %v79_v11 = vsel %vm76_vm0, %v69_v10, 0.0 }
  0x1c   :  { %88 = vadd.xlane.f32.xlu0 %v79_v11 }
  0x8f   :  { %v89_v12 = vpop.xlane.xlu0 %88 }
  0x90   :  { %v90_v13 = vrot.slane %v89_v12, 4 }
  0x92   :  { %v91_v14 = vadd.f32 %v90_v13, %v89_v12 }
  0x94   :  { %v92_v15 = vrot.slane %v91_v14, 2 }
  0x96   :  { %v93_v16 = vadd.f32 %v92_v15, %v91_v14 }
  0x98   :  { %v94_v17 = vrot.slane %v93_v16, 1 }
  0x9a   :  { %v95_v18 = vadd.f32 %v94_v17, %v93_v16 }
  0x9c   :  { %122 = vpush %v95_v18 }
  0xcd   :  { %s123_s22 = spop %122 }
  0xce   :  { %v97_v19 = vstv %s123_s22 }
  0xcf   :  { %99 = vst.msk [vmem:[#allocation8] sm:$0x1] %vm98_vm1, %v97_v19 }
  0xd0   :  { %110 = dma.vmem_to_hbm [thread:$0]  %s106_s1, 16, %s108_s21, [#allocation5]  }
  0xd1   :  { %207 = dma.done.wait [#allocation5], 16  }
  0xd2   :  { %208 = vsyncadd [#allocation5], 4294967280 }
  0xd3   :  { %115 = vsyncpa [#allocation4], 1 }
  0xd4   :  { %116 = vsyncpa [#allocation7], 1 }
  0xd5   :  { %117 = vsyncpa [#allocation5], 1 }

</bundles_post_ra>
